<compile_context>
chip_gen: v7x
topology: tpu7x:2x2x1
jax: 0.10.0
libtpu: 0.0.40
codegen_flags: <defaults>
</compile_context>

<pallas_src>
import functools

import jax
import jax.numpy as jnp
from jax.experimental import pallas as pl
from jax.experimental.pallas import tpu as pltpu

VMEM_LIMIT = 32 * 1024 * 1024  # safe on v5e/v6e (128 MiB) and v7x (64 MiB)


def _pick_tile(dim, cap, unit=128):
    """Largest multiple of `unit` <= cap that divides dim, else full dim."""
    if dim <= cap:
        return dim
    t = (cap // unit) * unit
    while t >= unit:
        if dim % t == 0:
            return t
        t -= unit
    return dim


# ----------------------------- Pallas kernels -----------------------------

def _layernorm_kernel(x_ref, g_ref, b_ref, o_ref, *, eps):
    x = x_ref[...].astype(jnp.float32)
    mean = jnp.mean(x, axis=-1, keepdims=True)
    var = jnp.mean(jnp.square(x - mean), axis=-1, keepdims=True)
    y = (x - mean) * jax.lax.rsqrt(var + eps)
    o_ref[...] = (y * g_ref[...].astype(jnp.float32)
                  + b_ref[...].astype(jnp.float32)).astype(o_ref.dtype)


def _linear_kernel(x_ref, w_ref, b_ref, o_ref, acc_ref, *, activation):
    # bf16 operands straight to the MXU, f32 accumulation in VMEM scratch.
    @pl.when(pl.program_id(2) == 0)
    def _():
        acc_ref[...] = jnp.zeros(acc_ref.shape, jnp.float32)

    acc_ref[...] += jnp.dot(x_ref[...], w_ref[...],
                            preferred_element_type=jnp.float32)

    @pl.when(pl.program_id(2) == pl.num_programs(2) - 1)
    def _():
        y = acc_ref[...] + b_ref[...].astype(jnp.float32)
        if activation == "gelu":
            # OpenAI gelu (gelu_impl in the reference), kept in f32 (EUP tanh).
            y = 0.5 * y * (1.0 + jnp.tanh(
                0.7978845608028654 * y * (1.0 + 0.044715 * y * y)))
        o_ref[...] = y.astype(o_ref.dtype)


def _rot_half(x, rdim):
    # rotate-half applied independently to each rdim-chunk of the head dim.
    half = rdim // 2
    x1a, x1b = x[:, :half], x[:, half:rdim]
    x2a, x2b = x[:, rdim:rdim + half], x[:, rdim + half:]
    return jnp.concatenate([-x1b, x1a, -x2b, x2a], axis=-1)


def _rope_kernel(qkv_ref, cos_ref, sin_ref, o_ref, *, dh, rdim):
    # One head's contiguous (S, 3*Dh) column block: [q | k | v].
    blk = qkv_ref[...].astype(jnp.float32)
    cos = cos_ref[...]
    sin = sin_ref[...]
    q = blk[:, 0 * dh:1 * dh]
    k = blk[:, 1 * dh:2 * dh]
    v = blk[:, 2 * dh:3 * dh]
    q = q * cos + _rot_half(q, rdim) * sin
    k = k * cos + _rot_half(k, rdim) * sin
    o_ref[...] = jnp.concatenate([q, k, v], axis=-1).astype(o_ref.dtype)


def _flash_attn_kernel(gmask_ref, q_ref, k_ref, v_ref, o_ref,
                       m_sc, l_sc, acc_sc, *, scale, tq, tk):
    qi = pl.program_id(1)
    ki = pl.program_id(2)
    gmask = gmask_ref[0]

    @pl.when(ki == 0)
    def _():
        m_sc[...] = jnp.full(m_sc.shape, -jnp.inf, jnp.float32)
        l_sc[...] = jnp.zeros(l_sc.shape, jnp.float32)
        acc_sc[...] = jnp.zeros(acc_sc.shape, jnp.float32)

    # Skip KV tiles that are fully masked for this Q tile (prefix-LM structure):
    # tile is visible iff kv_start <= last query row of the tile, or kv_start <= gmask.
    kv_start = ki * tk
    q_end = qi * tq + (tq - 1)
    visible = jnp.logical_or(kv_start <= q_end, kv_start <= gmask)

    @pl.when(visible)
    def _():
        q = q_ref[...]                                   # (tq, Dh) bf16
        k = k_ref[...]                                   # (tk, Dh) bf16
        s = jax.lax.dot_general(q, k, (((1,), (1,)), ((), ())),
                                preferred_element_type=jnp.float32) * scale
        row = qi * tq + jax.lax.broadcasted_iota(jnp.int32, (tq, tk), 0)
        col = ki * tk + jax.lax.broadcasted_iota(jnp.int32, (tq, tk), 1)
        allowed = jnp.logical_or(col <= row, col <= gmask)
        s = jnp.where(allowed, s, -1e30)                 # masking stays in f32

        m_prev = m_sc[...]
        m_new = jnp.maximum(m_prev, jnp.max(s, axis=-1, keepdims=True))
        a = jnp.exp(m_prev - m_new)
        p = jnp.exp(s - m_new)
        l_sc[...] = a * l_sc[...] + jnp.sum(p, axis=-1, keepdims=True)
        acc_sc[...] = a * acc_sc[...] + jnp.dot(
            p.astype(v_ref.dtype), v_ref[...], preferred_element_type=jnp.float32)
        m_sc[...] = m_new

    @pl.when(ki == pl.num_programs(2) - 1)
    def _():
        inv_l = pl.reciprocal(l_sc[...], approx=True)
        o_ref[...] = (acc_sc[...] * inv_l).astype(o_ref.dtype)


# ----------------------------- kernel wrappers -----------------------------

def pallas_layernorm(x, gamma, beta, eps, row_tile=256):
    S, D = x.shape
    ts = _pick_tile(S, row_tile, unit=8)
    return pl.pallas_call(
        functools.partial(_layernorm_kernel, eps=eps),
        out_shape=jax.ShapeDtypeStruct((S, D), x.dtype),
        grid=(S // ts,),
        in_specs=[pl.BlockSpec((ts, D), lambda i: (i, 0)),
                  pl.BlockSpec((1, D), lambda i: (0, 0)),
                  pl.BlockSpec((1, D), lambda i: (0, 0))],
        out_specs=pl.BlockSpec((ts, D), lambda i: (i, 0)),
        compiler_params=pltpu.CompilerParams(
            dimension_semantics=("parallel",),
            vmem_limit_bytes=VMEM_LIMIT),
    )(x, gamma.reshape(1, D), beta.reshape(1, D))


def pallas_linear(x, w, b, activation=None, tm=256, tn=256, tk=512):
    M, K = x.shape
    _, N = w.shape
    tm = _pick_tile(M, tm)
    tn = _pick_tile(N, tn)
    tk = _pick_tile(K, tk)
    return pl.pallas_call(
        functools.partial(_linear_kernel, activation=activation),
        out_shape=jax.ShapeDtypeStruct((M, N), x.dtype),
        grid=(M // tm, N // tn, K // tk),
        in_specs=[pl.BlockSpec((tm, tk), lambda i, j, k: (i, k)),
                  pl.BlockSpec((tk, tn), lambda i, j, k: (k, j)),
                  pl.BlockSpec((1, tn), lambda i, j, k: (0, j))],
        out_specs=pl.BlockSpec((tm, tn), lambda i, j, k: (i, j)),
        scratch_shapes=[pltpu.VMEM((tm, tn), jnp.float32)],
        compiler_params=pltpu.CompilerParams(
            dimension_semantics=("parallel", "parallel", "arbitrary"),
            vmem_limit_bytes=VMEM_LIMIT),
    )(x, w, b.reshape(1, N))


def pallas_rope(qkv, cos, sin, num_heads, head_dim):
    # qkv: (S, 3*D), per-head column layout [q|k|v]; returns rope-applied (S, 3*D).
    S, threeD = qkv.shape
    rdim = head_dim // 2
    blk = 3 * head_dim
    return pl.pallas_call(
        functools.partial(_rope_kernel, dh=head_dim, rdim=rdim),
        out_shape=jax.ShapeDtypeStruct((S, threeD), qkv.dtype),
        grid=(num_heads,),
        in_specs=[pl.BlockSpec((S, blk), lambda h: (0, h)),
                  pl.BlockSpec((S, head_dim), lambda h: (0, 0)),
                  pl.BlockSpec((S, head_dim), lambda h: (0, 0))],
        out_specs=pl.BlockSpec((S, blk), lambda h: (0, h)),
        compiler_params=pltpu.CompilerParams(
            dimension_semantics=("parallel",),
            vmem_limit_bytes=VMEM_LIMIT),
    )(qkv, cos, sin)


def pallas_flash_attention(qkv_rot, gmask_pos, num_heads, head_dim,
                           tq=256, tk=256):
    # qkv_rot: (S, 3*D) bf16, per-head column layout [q|k|v] (RoPE already applied).
    # Output: (S, D) with heads concatenated along the feature dim.
    S, _ = qkv_rot.shape
    D = num_heads * head_dim
    tq = _pick_tile(S, tq)
    tk = _pick_tile(S, tk)
    scale = 1.0 / (head_dim ** 0.5)
    gmask = jnp.full((1,), gmask_pos, jnp.int32)

    q_spec = pl.BlockSpec((tq, head_dim), lambda h, qi, ki, g: (qi, 3 * h + 0))
    k_spec = pl.BlockSpec((tk, head_dim), lambda h, qi, ki, g: (ki, 3 * h + 1))
    v_spec = pl.BlockSpec((tk, head_dim), lambda h, qi, ki, g: (ki, 3 * h + 2))
    o_spec = pl.BlockSpec((tq, head_dim), lambda h, qi, ki, g: (qi, h))

    return pl.pallas_call(
        functools.partial(_flash_attn_kernel, scale=scale, tq=tq, tk=tk),
        out_shape=jax.ShapeDtypeStruct((S, D), qkv_rot.dtype),
        grid_spec=pltpu.PrefetchScalarGridSpec(
            num_scalar_prefetch=1,
            grid=(num_heads, S // tq, S // tk),
            in_specs=[q_spec, k_spec, v_spec],
            out_specs=o_spec,
            scratch_shapes=[pltpu.VMEM((tq, 1), jnp.float32),
                            pltpu.VMEM((tq, 1), jnp.float32),
                            pltpu.VMEM((tq, head_dim), jnp.float32)]),
        compiler_params=pltpu.CompilerParams(
            dimension_semantics=("parallel", "parallel", "arbitrary"),
            vmem_limit_bytes=VMEM_LIMIT),
    )(gmask, qkv_rot, qkv_rot, qkv_rot)


# ------------------------------ model pieces -------------------------------

def rope_tables(pos0, pos1, rdim):
    """cos/sin tables of shape (S, 2*rdim) = (S, head_dim), f32.

    First rdim columns use pos0 frequencies, last rdim columns use pos1
    (ChatGLM 2D rotary), each in the rotate-half layout concat([f, f])."""
    inv_freq = 1.0 / (10000.0 ** (jnp.arange(0, rdim, 2, dtype=jnp.float32) / rdim))
    f0 = pos0.astype(jnp.float32)[:, None] * inv_freq[None, :]
    f1 = pos1.astype(jnp.float32)[:, None] * inv_freq[None, :]
    emb = jnp.concatenate([f0, f0, f1, f1], axis=-1)    # (S, 2*rdim)
    return jnp.cos(emb), jnp.sin(emb)


def multi_head_attention(params, hidden, gmask_pos, cfg, cos, sin):
    S, D = hidden.shape
    H = cfg["num_attention_heads"]
    Dh = D // H
    qkv = pallas_linear(hidden, params["qkv_w"], params["qkv_b"])        # (S, 3D)
    qkv = pallas_rope(qkv, cos, sin, H, Dh)                              # RoPE in-kernel
    ctx = pallas_flash_attention(qkv, gmask_pos, H, Dh)                  # (S, D)
    return pallas_linear(ctx, params["dense_w"], params["dense_b"])


def mlp(params, hidden):
    h = pallas_linear(hidden, params["fc1_w"], params["fc1_b"], activation="gelu")
    return pallas_linear(h, params["fc2_w"], params["fc2_b"])


def block(params, hidden, gmask_pos, cfg, cos, sin):
    alpha = (2 * 28) ** 0.5          # fixed in the reference Block
    eps = cfg["layernorm_epsilon"]
    attn_in = pallas_layernorm(hidden, params["ln1_g"], params["ln1_b"], eps)
    attn_out = multi_head_attention(params, attn_in, gmask_pos, cfg, cos, sin)
    hidden = alpha * attn_in + attn_out                  # residual glue (XLA)
    mlp_in = pallas_layernorm(hidden, params["ln2_g"], params["ln2_b"], eps)
    mlp_out = mlp(params, mlp_in)
    return alpha * mlp_in + mlp_out


def model_forward(params, input_ids, position_ids, gmask_pos, cfg):
    D = cfg["hidden_size"]
    H = cfg["num_attention_heads"]
    Dh = D // H
    hidden = jnp.take(params["emb"], input_ids, axis=0)  # embedding gather (glue)
    cos, sin = rope_tables(position_ids[0], position_ids[1], Dh // 2)
    layers_output = [hidden]
    for lp in params["layers"]:
        hidden = block(lp, hidden, gmask_pos, cfg, cos, sin)
        layers_output.append(hidden)
    final = pallas_layernorm(hidden, params["final_ln_g"], params["final_ln_b"],
                             cfg["layernorm_epsilon"])
    return final, layers_output


# ------------------------------ param init ---------------------------------

def init_params(key, cfg):
    D = cfg["hidden_size"]
    Di = cfg["inner_hidden_size"]
    V = cfg["vocab_size"]
    wdt = jnp.bfloat16
    ks = jax.random.split(key, 1 + 6 * cfg["num_layers"])
    params = {
        "emb": (jax.random.normal(ks[0], (V, D), jnp.float32) * 0.02).astype(wdt),
        "final_ln_g": jnp.ones((D,), jnp.float32),
        "final_ln_b": jnp.zeros((D,), jnp.float32),
        "layers": [],
    }
    ki = 1
    for _ in range(cfg["num_layers"]):
        lp = {
            "ln1_g": jnp.ones((D,), jnp.float32),
            "ln1_b": jnp.zeros((D,), jnp.float32),
            "ln2_g": jnp.ones((D,), jnp.float32),
            "ln2_b": jnp.zeros((D,), jnp.float32),
            # weights stored (in, out) == transposed PyTorch Linear weight; bf16
            "qkv_w": (jax.random.normal(ks[ki + 0], (D, 3 * D), jnp.float32) * 0.02).astype(wdt),
            "qkv_b": jnp.zeros((3 * D,), jnp.float32),
            "dense_w": (jax.random.normal(ks[ki + 1], (D, D), jnp.float32) * 0.02).astype(wdt),
            "dense_b": jnp.zeros((D,), jnp.float32),
            "fc1_w": (jax.random.normal(ks[ki + 2], (D, Di), jnp.float32) * 0.02).astype(wdt),
            "fc1_b": jnp.zeros((Di,), jnp.float32),
            "fc2_w": (jax.random.normal(ks[ki + 3], (Di, D), jnp.float32) * 0.02).astype(wdt),
            "fc2_b": jnp.zeros((D,), jnp.float32),
        }
        params["layers"].append(lp)
        ki += 6
    return params


# ---------------------------------- main ------------------------------------

if __name__ == "__main__":
    # TPU-tile-friendly small config (head_dim = 128 lanes, seq multiple of 128).
    cfg = dict(
        hidden_size=256,
        inner_hidden_size=1024,
        num_attention_heads=2,
        num_layers=2,
        vocab_size=512,
        layernorm_epsilon=1e-5,
        gmask_token_id=5,
    )
    S = 128
    key = jax.random.PRNGKey(0)
    pkey, ikey = jax.random.split(key)
    params = init_params(pkey, cfg)

    # deterministic input ids containing the gmask token
    input_ids = jax.random.randint(ikey, (S,), 0, cfg["vocab_size"], dtype=jnp.int32)
    input_ids = input_ids.at[S - 2].set(cfg["gmask_token_id"])
    # gmask_pos computed on host, mirroring input_ids.tolist().index(...)
    gmask_pos = list(jax.device_get(input_ids)).index(cfg["gmask_token_id"])

    # ChatGLM 2D positions: row0 = absolute pos (clamped at gmask), row1 = block pos
    pos0 = jnp.minimum(jnp.arange(S, dtype=jnp.int32), gmask_pos)
    pos1 = jnp.maximum(jnp.arange(S, dtype=jnp.int32) - gmask_pos, 0)
    position_ids = jnp.stack([pos0, pos1], axis=0)                      # (2, S)

    final, layers_output = model_forward(params, input_ids, position_ids, gmask_pos, cfg)
    final = jax.block_until_ready(final)
    for h in layers_output:
        jax.block_until_ready(h)

    assert final.shape == (S, cfg["hidden_size"])
    assert len(layers_output) == cfg["num_layers"] + 1
    assert bool(jnp.all(jnp.isfinite(final.astype(jnp.float32))))
    print("KERNEL_OK")
</pallas_src>

<mosaic_0001>
module attributes {stable_mosaic.version = 11 : i64} {
  func.func @_layernorm_kernel(%arg0: i32, %arg1: memref<128x256xbf16, #tpu.memory_space<vmem>>, %arg2: memref<1x256xf32, #tpu.memory_space<vmem>>, %arg3: memref<1x256xf32, #tpu.memory_space<vmem>>, %arg4: memref<128x256xbf16, #tpu.memory_space<vmem>>) attributes {dimension_semantics = [#tpu.dimension_semantics<parallel>], iteration_bounds = array<i64: 1>, scalar_prefetch = 0 : i64, scratch_operands = 0 : i64, tpu.core_type = #tpu.core_type<tc>, window_params = [{transform_indices = @transform_0, window_bounds = array<i64: 128, 256>}, {pipeline_mode = #tpu.pipeline_mode<synchronous>, transform_indices = @transform_1, window_bounds = array<i64: 1, 256>}, {pipeline_mode = #tpu.pipeline_mode<synchronous>, transform_indices = @transform_2, window_bounds = array<i64: 1, 256>}, {transform_indices = @transform_3, window_bounds = array<i64: 128, 256>}]} {
    %c0 = arith.constant 0 : index
    %c0_0 = arith.constant 0 : index
    %0 = vector.load %arg1[%c0, %c0_0] : memref<128x256xbf16, #tpu.memory_space<vmem>>, vector<128x256xbf16>
    %1 = arith.extf %0 : vector<128x256xbf16> to vector<128x256xf32>
    %cst = arith.constant dense<0.000000e+00> : vector<128xf32>
    %2 = vector.multi_reduction <add>, %1, %cst [1] : vector<128x256xf32> to vector<128xf32>
    %3 = vector.shape_cast %2 : vector<128xf32> to vector<128x1xf32>
    %cst_1 = arith.constant 2.560000e+02 : f32
    %4 = vector.broadcast %cst_1 : f32 to vector<128x1xf32>
    %5 = arith.divf %3, %4 : vector<128x1xf32>
    %6 = vector.broadcast %5 : vector<128x1xf32> to vector<128x256xf32>
    %7 = arith.subf %1, %6 : vector<128x256xf32>
    %8 = arith.mulf %7, %7 : vector<128x256xf32>
    %cst_2 = arith.constant dense<0.000000e+00> : vector<128xf32>
    %9 = vector.multi_reduction <add>, %8, %cst_2 [1] : vector<128x256xf32> to vector<128xf32>
    %10 = vector.shape_cast %9 : vector<128xf32> to vector<128x1xf32>
    %cst_3 = arith.constant 2.560000e+02 : f32
    %11 = vector.broadcast %cst_3 : f32 to vector<128x1xf32>
    %12 = arith.divf %10, %11 : vector<128x1xf32>
    %13 = vector.broadcast %5 : vector<128x1xf32> to vector<128x256xf32>
    %14 = arith.subf %1, %13 : vector<128x256xf32>
    %cst_4 = arith.constant 9.99999974E-6 : f32
    %15 = vector.broadcast %cst_4 : f32 to vector<128x1xf32>
    %16 = arith.addf %12, %15 : vector<128x1xf32>
    %17 = math.rsqrt %16 : vector<128x1xf32>
    %18 = vector.broadcast %17 : vector<128x1xf32> to vector<128x256xf32>
    %19 = arith.mulf %14, %18 : vector<128x256xf32>
    %c0_5 = arith.constant 0 : index
    %c0_6 = arith.constant 0 : index
    %20 = vector.load %arg2[%c0_5, %c0_6] : memref<1x256xf32, #tpu.memory_space<vmem>>, vector<1x256xf32>
    %21 = vector.broadcast %20 : vector<1x256xf32> to vector<128x256xf32>
    %22 = arith.mulf %19, %21 : vector<128x256xf32>
    %c0_7 = arith.constant 0 : index
    %c0_8 = arith.constant 0 : index
    %23 = vector.load %arg3[%c0_7, %c0_8] : memref<1x256xf32, #tpu.memory_space<vmem>>, vector<1x256xf32>
    %24 = vector.broadcast %23 : vector<1x256xf32> to vector<128x256xf32>
    %25 = arith.addf %22, %24 : vector<128x256xf32>
    %26 = arith.truncf %25 : vector<128x256xf32> to vector<128x256xbf16>
    %c0_9 = arith.constant 0 : index
    %c0_10 = arith.constant 0 : index
    %27 = vector.load %arg4[%c0_9, %c0_10] : memref<128x256xbf16, #tpu.memory_space<vmem>>, vector<128x256xbf16>
    tpu.vector_store %arg4[%c0_9, %c0_10], %26 {strides = array<i32>} : memref<128x256xbf16, #tpu.memory_space<vmem>>, vector<128x256xbf16>,
    return
  }
  func.func @transform_0(%arg0: i32) -> (i32, i32) {
    %c0_i32 = arith.constant 0 : i32
    %c0_i32_0 = arith.constant 0 : i32
    return %arg0, %c0_i32 : i32, i32
  }
  func.func @transform_1(%arg0: i32) -> (i32, i32) {
    %c0_i32 = arith.constant 0 : i32
    %c0_i32_0 = arith.constant 0 : i32
    %c0_i32_1 = arith.constant 0 : i32
    return %c0_i32, %c0_i32_0 : i32, i32
  }
  func.func @transform_2(%arg0: i32) -> (i32, i32) {
    %c0_i32 = arith.constant 0 : i32
    %c0_i32_0 = arith.constant 0 : i32
    %c0_i32_1 = arith.constant 0 : i32
    return %c0_i32, %c0_i32_0 : i32, i32
  }
  func.func @transform_3(%arg0: i32) -> (i32, i32) {
    %c0_i32 = arith.constant 0 : i32
    %c0_i32_0 = arith.constant 0 : i32
    return %arg0, %c0_i32 : i32, i32
  }
}

</mosaic_0001>

<bundles_post_ra>
// kernel: tpu_custom_call.1
= control target key start
LH: loop header
LB: loop body
LE: loop exit
PB: predicated region body
PF: predicated region fallthrough
CT: control target
= control target key end

     0   :  { %8 = vsyncpa [#allocation3], 0  ;;  %s1151_s0 = inlined_call_operand.hbm [shape: bf16[128,256], index: 0, kind: input, shape index: {}]   ;;  %s1152_s1 = inlined_call_operand.vmem [shape: f32[1,256], index: 1, kind: input, shape index: {}]   ;;  %s1153_s2 = inlined_call_operand.vmem [shape: f32[1,256], index: 2, kind: input, shape index: {}]   ;;  %s1154_s3 = inlined_call_operand.hbm [shape: bf16[128,256], index: 3, kind: output, shape index: {}]  }
   0x1   :  { %9 = vsyncpa [#allocation4], 0  ;;  %s667_s12 = smov [#allocation2]   ;;  %s619_s16 = scalar_lea.hbm %s1151_s0, 2048 }
   0x2   :  { %s15_s13 = sshll.u32 %s667_s12, 4  ;;  %p620_p0 = scmp.ne.s32.totalorder %s1151_s0, %s619_s16  ;;  %s16_s13 = int_to_ptr.vmem [resolvable:$true] %s15_s13 }
   0x3   :  { %p623_p1 = scmp.lt.u32.totalorder %s619_s16, %s1151_s0 }
   0x5   :  { %p625_p2 = pnand %p623_p1, %p620_p0 }
   0x7   :  { %628 = shalt.err (!%p625_p2)
}
   0x8   :  { %s629_s21 = scalar_lea.vmem %s16_s13, 2048  ;;  %p634_p4 = scmp.lt.s32.totalorder %s16_s13, %s16_s13 }
   0x9   :  { %p630_p3 = scmp.ne.s32.totalorder %s16_s13, %s629_s21  ;;  %p635_p5 = scmp.lt.s32.totalorder %s629_s21, %s629_s21 }
   0xb   :  { %p636_p6 = por %p635_p5, %p634_p4 }
   0xd   :  { %p637_p7 = pnand %p636_p6, %p630_p3 }
   0xf   :  { %640 = shalt.err (!%p637_p7)
}
  0x10   :  { %s668_s22 = smov 128   ;;  %s669_s23 = smov 8  }
  0x11   :  { %21 = dma.hbm_to_vmem [thread:$0]  %s1151_s0, 2048, %s16_s13, [#allocation3], %s668_s22, %s668_s22, %s669_s23  }
  0x12   :  { %663 = dma.done.wait [#allocation3], 2048  }
  0x13   :  { %664 = vsyncadd [#allocation3], 4294965248  ;;  %v706_v0 = vld [vmem:[#allocation2] sm:$0xff]  ;;  %v708_v1 = vld [vmem:[#allocation2 + $0x10] sm:$0xff] }
  0x14   :  { %v710_v2 = vld [vmem:[#allocation2 + $0x8] sm:$0xff]  ;;  %v45_v3 = vunpack.c.l.bf16 %v706_v0  ;;  %v46_v4 = vunpack.c.h.bf16 %v706_v0  ;;  %v49_v5 = vunpack.c.l.bf16 %v708_v1  ;;  %v50_v6 = vunpack.c.h.bf16 %v708_v1  ;;  %v716_v7 = vld [vmem:[#allocation2 + $0x18] sm:$0xff]  ;;  %v718_v8 = vld [vmem:[#allocation2 + $0x20] sm:$0xff] }
  0x15   :  { %v47_v9 = vunpack.c.l.bf16 %v710_v2  ;;  %v48_v10 = vunpack.c.h.bf16 %v710_v2  ;;  %v51_v11 = vunpack.c.l.bf16 %v716_v7  ;;  %v52_v12 = vunpack.c.h.bf16 %v716_v7  ;;  %v724_v13 = vld [vmem:[#allocation2 + $0x28] sm:$0xff]  ;;  %v746_v22 = vld [vmem:[#allocation2 + $0x30] sm:$0xff]  ;;  %v748_v23 = vld [vmem:[#allocation2 + $0x38] sm:$0xff] }
  0x16   :  { %v77_v14 = vadd.f32 %v46_v4, %v45_v3  ;;  %v83_v15 = vadd.f32 %v50_v6, %v49_v5  ;;  %v53_v16 = vunpack.c.l.bf16 %v718_v8  ;;  %v54_v17 = vunpack.c.h.bf16 %v718_v8  ;;  %v762_v30 = vld [vmem:[#allocation2 + $0x40] sm:$0xff]  ;;  %v764_v31 = vld [vmem:[#allocation2 + $0x48] sm:$0xff]  ;;  %v778_v38 = vld [vmem:[#allocation2 + $0x50] sm:$0xff] }
  0x17   :  { %v80_v18 = vadd.f32 %v48_v10, %v47_v9  ;;  %v86_v19 = vadd.f32 %v52_v12, %v51_v11  ;;  %v55_v20 = vunpack.c.l.bf16 %v724_v13  ;;  %v56_v21 = vunpack.c.h.bf16 %v724_v13  ;;  %v780_v39 = vld [vmem:[#allocation2 + $0x58] sm:$0xff]  ;;  %v794_v46 = vld [vmem:[#allocation2 + $0x60] sm:$0xff]  ;;  %v796_v47 = vld [vmem:[#allocation2 + $0x68] sm:$0xff] }
  0x18   :  { %78 = vadd.xlane.f32.xlu0 %v77_v14  ;;  %84 = vadd.xlane.f32.xlu1 %v83_v15  ;;  %v89_v24 = vadd.f32 %v54_v17, %v53_v16  ;;  %v57_v25 = vunpack.c.l.bf16 %v746_v22  ;;  %v58_v27 = vunpack.c.h.bf16 %v746_v22  ;;  %v59_v28 = vunpack.c.l.bf16 %v748_v23  ;;  %v810_v54 = vld [vmem:[#allocation2 + $0x70] sm:$0xff]  ;;  %v812_v55 = vld [vmem:[#allocation2 + $0x78] sm:$0xff] }
  0x19   :  { %v92_v26 = vadd.f32 %v56_v21, %v55_v20  ;;  %v60_v29 = vunpack.c.h.bf16 %v748_v23  ;;  %v61_v32 = vunpack.c.l.bf16 %v762_v30  ;;  %v62_v33 = vunpack.c.h.bf16 %v762_v30 }
  0x1a   :  { %v95_v34 = vadd.f32 %v58_v27, %v57_v25  ;;  %v63_v36 = vunpack.c.l.bf16 %v764_v31  ;;  %v64_v37 = vunpack.c.h.bf16 %v764_v31  ;;  %v65_v41 = vunpack.c.l.bf16 %v778_v38 }
  0x1b   :  { %v98_v35 = vadd.f32 %v60_v29, %v59_v28  ;;  %v101_v40 = vadd.f32 %v62_v33, %v61_v32  ;;  %v66_v43 = vunpack.c.h.bf16 %v778_v38  ;;  %v67_v44 = vunpack.c.l.bf16 %v780_v39 }
  0x1c   :  { %81 = vadd.xlane.f32.xlu0 %v80_v18  ;;  %87 = vadd.xlane.f32.xlu1 %v86_v19  ;;  %v104_v42 = vadd.f32 %v64_v37, %v63_v36  ;;  %v68_v45 = vunpack.c.h.bf16 %v780_v39  ;;  %v69_v48 = vunpack.c.l.bf16 %v794_v46  ;;  %v70_v49 = vunpack.c.h.bf16 %v794_v46 }
  0x1d   :  { %v107_v50 = vadd.f32 %v66_v43, %v65_v41  ;;  %v71_v52 = vunpack.c.l.bf16 %v796_v47  ;;  %v72_v53 = vunpack.c.h.bf16 %v796_v47  ;;  %v73_v57 = vunpack.c.l.bf16 %v810_v54 }
  0x1e   :  { %v110_v51 = vadd.f32 %v68_v45, %v67_v44  ;;  %v113_v56 = vadd.f32 %v70_v49, %v69_v48  ;;  %v74_v59 = vunpack.c.h.bf16 %v810_v54  ;;  %v75_v60 = vunpack.c.l.bf16 %v812_v55 }
  0x1f   :  { %v116_v58 = vadd.f32 %v72_v53, %v71_v52  ;;  %v76_v61 = vunpack.c.h.bf16 %v812_v55 }
  0x20   :  { %90 = vadd.xlane.f32.xlu0 %v89_v24  ;;  %93 = vadd.xlane.f32.xlu1 %v92_v26  ;;  %v119_v62 = vadd.f32 %v74_v59, %v73_v57 }
  0x21   :  { %v122_v63 = vadd.f32 %v76_v61, %v75_v60 }
  0x24   :  { %96 = vadd.xlane.f32.xlu0 %v95_v34  ;;  %99 = vadd.xlane.f32.xlu1 %v98_v35 }
  0x28   :  { %102 = vadd.xlane.f32.xlu0 %v101_v40  ;;  %105 = vadd.xlane.f32.xlu1 %v104_v42 }
  0x2c   :  { %108 = vadd.xlane.f32.xlu0 %v107_v50  ;;  %111 = vadd.xlane.f32.xlu1 %v110_v51 }
  0x30   :  { %114 = vadd.xlane.f32.xlu0 %v113_v56  ;;  %117 = vadd.xlane.f32.xlu1 %v116_v58 }
  0x34   :  { %120 = vadd.xlane.f32.xlu0 %v119_v62  ;;  %123 = vadd.xlane.f32.xlu1 %v122_v63 }
  0xa5   :  { %v79_v14 = vpop.xlane.xlu0 %78  ;;  %v85_v15 = vpop.xlane.xlu1 %84 }
  0xa6   :  { %v126_v18 = vmul.f32 0.00390625, %v79_v14  ;;  %v128_v19 = vmul.f32 0.00390625, %v85_v15 }
  0xa8   :  { %v836_v24 = vsub.f32 %v45_v3, %v126_v18  ;;  %v840_v26 = vsub.f32 %v46_v4, %v126_v18  ;;  %v844_v34 = vsub.f32 %v49_v5, %v128_v19  ;;  %v848_v35 = vsub.f32 %v50_v6, %v128_v19 }
  0xa9   :  { %v82_v40 = vpop.xlane.xlu0 %81  ;;  %v88_v42 = vpop.xlane.xlu1 %87 }
  0xaa   :  { %v127_v50 = vmul.f32 0.00390625, %v82_v40  ;;  %v129_v51 = vmul.f32 0.00390625, %v88_v42  ;;  %v174_v3 = vmul.f32 %v836_v24, %v836_v24  ;;  %v175_v0 = vmul.f32 %v840_v26, %v840_v26 }
  0xab   :  { %v178_v4 = vmul.f32 %v844_v34, %v844_v34  ;;  %v179_v5 = vmul.f32 %v848_v35, %v848_v35 }
  0xac   :  { %v860_v1 = vsub.f32 %v47_v9, %v127_v50  ;;  %v864_v6 = vsub.f32 %v48_v10, %v127_v50  ;;  %v868_v56 = vsub.f32 %v51_v11, %v129_v51  ;;  %v872_v58 = vsub.f32 %v52_v12, %v129_v51 }
  0xad   :  { %v91_v62 = vpop.xlane.xlu0 %90  ;;  %v206_v63 = vadd.f32 %v175_v0, %v174_v3  ;;  %v94_v14 = vpop.xlane.xlu1 %93  ;;  %v212_v10 = vadd.f32 %v179_v5, %v178_v4 }
  0xae   :  { %v130_v15 = vmul.f32 0.00390625, %v91_v62  ;;  %v131_v18 = vmul.f32 0.00390625, %v94_v14  ;;  %v176_v9 = vmul.f32 %v860_v1, %v860_v1  ;;  %v177_v2 = vmul.f32 %v864_v6, %v864_v6 }
  0xaf   :  { %207 = vadd.xlane.f32.xlu0 %v206_v63  ;;  %v180_v11 = vmul.f32 %v868_v56, %v868_v56  ;;  %v181_v7 = vmul.f32 %v872_v58, %v872_v58 }
  0xb0   :  { %v884_v12 = vsub.f32 %v53_v16, %v130_v15  ;;  %v888_v19 = vsub.f32 %v54_v17, %v130_v15  ;;  %v892_v40 = vsub.f32 %v55_v20, %v131_v18  ;;  %v896_v42 = vsub.f32 %v56_v21, %v131_v18 }
  0xb1   :  { %v97_v50 = vpop.xlane.xlu0 %96  ;;  %v209_v51 = vadd.f32 %v177_v2, %v176_v9  ;;  %v100_v3 = vpop.xlane.xlu1 %99  ;;  %v215_v17 = vadd.f32 %v181_v7, %v180_v11 }
  0xb2   :  { %v132_v0 = vmul.f32 0.00390625, %v97_v50  ;;  %v133_v4 = vmul.f32 0.00390625, %v100_v3  ;;  %v182_v16 = vmul.f32 %v884_v12, %v884_v12  ;;  %v183_v8 = vmul.f32 %v888_v19, %v888_v19 }
  0xb3   :  { %213 = vadd.xlane.f32.xlu0 %v212_v10  ;;  %210 = vadd.xlane.f32.xlu1 %v209_v51  ;;  %v184_v20 = vmul.f32 %v892_v40, %v892_v40  ;;  %v185_v13 = vmul.f32 %v896_v42, %v896_v42 }
  0xb4   :  { %v908_v21 = vsub.f32 %v57_v25, %v132_v0  ;;  %v912_v5 = vsub.f32 %v58_v27, %v132_v0  ;;  %v916_v62 = vsub.f32 %v59_v28, %v133_v4  ;;  %v920_v63 = vsub.f32 %v60_v29, %v133_v4 }
  0xb5   :  { %v103_v14 = vpop.xlane.xlu0 %102  ;;  %v218_v15 = vadd.f32 %v183_v8, %v182_v16  ;;  %v106_v18 = vpop.xlane.xlu1 %105  ;;  %v221_v27 = vadd.f32 %v185_v13, %v184_v20 }
  0xb6   :  { %v134_v9 = vmul.f32 0.00390625, %v103_v14  ;;  %v135_v2 = vmul.f32 0.00390625, %v106_v18  ;;  %v186_v25 = vmul.f32 %v908_v21, %v908_v21  ;;  %v187_v22 = vmul.f32 %v912_v5, %v912_v5 }
  0xb7   :  { %216 = vadd.xlane.f32.xlu1 %v215_v17  ;;  %219 = vadd.xlane.f32.xlu0 %v218_v15  ;;  %v188_v28 = vmul.f32 %v916_v62, %v916_v62  ;;  %v189_v23 = vmul.f32 %v920_v63, %v920_v63 }
  0xb8   :  { %v932_v29 = vsub.f32 %v61_v32, %v134_v9  ;;  %v936_v10 = vsub.f32 %v62_v33, %v134_v9  ;;  %v940_v11 = vsub.f32 %v63_v36, %v135_v2  ;;  %v944_v7 = vsub.f32 %v64_v37, %v135_v2 }
  0xb9   :  { %v109_v50 = vpop.xlane.xlu0 %108  ;;  %v224_v51 = vadd.f32 %v187_v22, %v186_v25  ;;  %v112_v3 = vpop.xlane.xlu1 %111  ;;  %v227_v33 = vadd.f32 %v189_v23, %v188_v28 }
  0xba   :  { %v136_v0 = vmul.f32 0.00390625, %v109_v50  ;;  %v137_v4 = vmul.f32 0.00390625, %v112_v3  ;;  %v190_v32 = vmul.f32 %v932_v29, %v932_v29  ;;  %v191_v30 = vmul.f32 %v936_v10, %v936_v10 }
  0xbb   :  { %222 = vadd.xlane.f32.xlu1 %v221_v27  ;;  %225 = vadd.xlane.f32.xlu0 %v224_v51  ;;  %v192_v36 = vmul.f32 %v940_v11, %v940_v11  ;;  %v193_v31 = vmul.f32 %v944_v7, %v944_v7 }
  0xbc   :  { %v956_v37 = vsub.f32 %v65_v41, %v136_v0  ;;  %v960_v16 = vsub.f32 %v66_v43, %v136_v0  ;;  %v964_v8 = vsub.f32 %v67_v44, %v137_v4  ;;  %v968_v17 = vsub.f32 %v68_v45, %v137_v4 }
  0xbd   :  { %v115_v20 = vpop.xlane.xlu0 %114  ;;  %v230_v13 = vadd.f32 %v191_v30, %v190_v32  ;;  %v118_v14 = vpop.xlane.xlu1 %117  ;;  %v233_v43 = vadd.f32 %v193_v31, %v192_v36  ;;  %v336_v36 = vlaneseq }
  0xbe   :  { %v138_v15 = vmul.f32 0.00390625, %v115_v20  ;;  %v139_v18 = vmul.f32 0.00390625, %v118_v14  ;;  %v194_v41 = vmul.f32 %v956_v37, %v956_v37  ;;  %v195_v38 = vmul.f32 %v960_v16, %v960_v16 }
  0xbf   :  { %228 = vadd.xlane.f32.xlu1 %v227_v33  ;;  %231 = vadd.xlane.f32.xlu0 %v230_v13  ;;  %v196_v44 = vmul.f32 %v964_v8, %v964_v8  ;;  %v197_v39 = vmul.f32 %v968_v17, %v968_v17 }
  0xc0   :  { %v980_v45 = vsub.f32 %v69_v48, %v138_v15  ;;  %v984_v9 = vsub.f32 %v70_v49, %v138_v15  ;;  %v988_v2 = vsub.f32 %v71_v52, %v139_v18  ;;  %v992_v25 = vsub.f32 %v72_v53, %v139_v18 }
  0xc1   :  { %v121_v22 = vpop.xlane.xlu0 %120  ;;  %v236_v27 = vadd.f32 %v195_v38, %v194_v41  ;;  %v124_v28 = vpop.xlane.xlu1 %123  ;;  %v239_v49 = vadd.f32 %v197_v39, %v196_v44  ;;  %v337_v18 = vshrl.u32 %v336_v36, 7 }
  0xc2   :  { %v140_v23 = vmul.f32 0.00390625, %v121_v22  ;;  %v141_v50 = vmul.f32 0.00390625, %v124_v28  ;;  %v198_v48 = vmul.f32 %v980_v45, %v980_v45  ;;  %v199_v46 = vmul.f32 %v984_v9, %v984_v9 }
  0xc3   :  { %234 = vadd.xlane.f32.xlu1 %v233_v43  ;;  %237 = vadd.xlane.f32.xlu0 %v236_v27  ;;  %v200_v52 = vmul.f32 %v988_v2, %v988_v2  ;;  %v201_v47 = vmul.f32 %v992_v25, %v992_v25  ;;  %v338_v27 = vsub.s32 0, %v337_v18  ;;  %v342_v28 = vsub.s32 1, %v337_v18 }
  0xc4   :  { %v1004_v53 = vsub.f32 %v73_v57, %v140_v23  ;;  %v1008_v51 = vsub.f32 %v74_v59, %v140_v23  ;;  %v1012_v3 = vsub.f32 %v75_v60, %v141_v50  ;;  %v1016_v0 = vsub.f32 %v76_v61, %v141_v50  ;;  %v334_v23 = vld [vmem:[%s1152_s1] sm:$0x3]  ;;  %s670_s1 = smov [#allocation5]  }
  0xc5   :  { %v242_v4 = vadd.f32 %v199_v46, %v198_v48  ;;  %v245_v54 = vadd.f32 %v201_v47, %v200_v52  ;;  %v378_v52 = vld [vmem:[%s1153_s2] sm:$0x3]  ;;  %s539_s2 = sshll.u32 %s670_s1, 4  ;;  %s540_s2 = int_to_ptr.vmem [resolvable:$true] %s539_s2 }
  0xc6   :  { %v202_v32 = vmul.f32 %v1004_v53, %v1004_v53  ;;  %v203_v57 = vmul.f32 %v1008_v51, %v1008_v51  ;;  %v204_v59 = vmul.f32 %v1012_v3, %v1012_v3  ;;  %v205_v60 = vmul.f32 %v1016_v0, %v1016_v0  ;;  %s641_s29 = scalar_lea.vmem %s540_s2, 2048  ;;  %p646_p9 = scmp.lt.s32.totalorder %s540_s2, %s540_s2 }
  0xc7   :  { %240 = vadd.xlane.f32.xlu1 %v239_v49  ;;  %243 = vadd.xlane.f32.xlu0 %v242_v4  ;;  %p642_p8 = scmp.ne.s32.totalorder %s540_s2, %s641_s29  ;;  %p647_p10 = scmp.lt.s32.totalorder %s641_s29, %s641_s29 }
  0xc8   :  { %v248_v30 = vadd.f32 %v203_v57, %v202_v32  ;;  %v251_v55 = vadd.f32 %v205_v60, %v204_v59  ;;  %v1032_v32 = vrot.slane %v334_v23, %v338_v27  ;;  %v1034_v57 = vrot.slane %v334_v23, %v342_v28 }
  0xc9   :  { %p648_p11 = por %p647_p10, %p646_p9 }
  0xcb   :  { %246 = vadd.xlane.f32.xlu1 %v245_v54  ;;  %249 = vadd.xlane.f32.xlu0 %v248_v30  ;;  %v1036_v30 = vrot.slane %v378_v52, %v338_v27  ;;  %p649_p12 = pnand %p648_p11, %p642_p8 }
  0xcf   :  { %252 = vadd.xlane.f32.xlu1 %v251_v55  ;;  %v1038_v55 = vrot.slane %v378_v52, %v342_v28 }
 0x13c   :  { %v208_v61 = vpop.xlane.xlu0 %207 }
 0x13d   :  { %v254_v33 = vmul.f32 0.00390625, %v208_v61 }
 0x13f   :  { %v270_v31 = vadd.f32 1e-05, %v254_v33 }
 0x140   :  { %v211_v20 = vpop.xlane.xlu1 %210  ;;  %v214_v13 = vpop.xlane.xlu0 %213 }
 0x141   :  { %587 = vrsqrt.f32 %v270_v31  ;;  %v255_v14 = vmul.f32 0.00390625, %v211_v20  ;;  %v256_v15 = vmul.f32 0.00390625, %v214_v13 }
 0x143   :  { %v271_v41 = vadd.f32 1e-05, %v255_v14  ;;  %v272_v38 = vadd.f32 1e-05, %v256_v15 }
 0x144   :  { %v217_v43 = vpop.xlane.xlu1 %216  ;;  %v220_v44 = vpop.xlane.xlu0 %219 }
 0x145   :  { %589 = vrsqrt.f32 %v271_v41  ;;  %v257_v39 = vmul.f32 0.00390625, %v217_v43  ;;  %v258_v22 = vmul.f32 0.00390625, %v220_v44 }
 0x146   :  { %591 = vrsqrt.f32 %v272_v38 }
 0x147   :  { %v273_v50 = vadd.f32 1e-05, %v257_v39  ;;  %v274_v48 = vadd.f32 1e-05, %v258_v22 }
 0x148   :  { %v223_v46 = vpop.xlane.xlu1 %222  ;;  %v226_v49 = vpop.xlane.xlu0 %225 }
 0x149   :  { %593 = vrsqrt.f32 %v273_v50  ;;  %v259_v47 = vmul.f32 0.00390625, %v223_v46  ;;  %v260_v4 = vmul.f32 0.00390625, %v226_v49 }
 0x14a   :  { %595 = vrsqrt.f32 %v274_v48 }
 0x14b   :  { %v588_v54 = vpop.eup %587  ;;  %v275_v59 = vadd.f32 1e-05, %v259_v47  ;;  %v276_v60 = vadd.f32 1e-05, %v260_v4 }
 0x14c   :  { %v302_v61 = vmul.f32 %v588_v54, %v836_v24  ;;  %v303_v33 = vmul.f32 %v588_v54, %v840_v26  ;;  %v229_v36 = vpop.xlane.xlu1 %228  ;;  %v232_v31 = vpop.xlane.xlu0 %231 }
 0x14d   :  { %597 = vrsqrt.f32 %v275_v59  ;;  %v261_v20 = vmul.f32 0.00390625, %v229_v36  ;;  %v262_v13 = vmul.f32 0.00390625, %v232_v31 }
 0x14e   :  { %v346_v14 = vmul.f32 %v1032_v32, %v302_v61  ;;  %v347_v15 = vmul.f32 %v1034_v57, %v303_v33  ;;  %599 = vrsqrt.f32 %v276_v60 }
 0x14f   :  { %v590_v18 = vpop.eup %589  ;;  %v277_v41 = vadd.f32 1e-05, %v261_v20  ;;  %v278_v38 = vadd.f32 1e-05, %v262_v13 }
 0x150   :  { %v592_v43 = vpop.eup %591  ;;  %v390_v44 = vadd.f32 %v1036_v30, %v346_v14  ;;  %v391_v24 = vadd.f32 %v1038_v55, %v347_v15  ;;  %v304_v26 = vmul.f32 %v590_v18, %v860_v1  ;;  %v305_v39 = vmul.f32 %v590_v18, %v864_v6  ;;  %v235_v22 = vpop.xlane.xlu1 %234 }
 0x151   :  { %v238_v27 = vpop.xlane.xlu0 %237  ;;  %v306_v28 = vmul.f32 %v592_v43, %v844_v34  ;;  %v307_v23 = vmul.f32 %v592_v43, %v848_v35  ;;  %601 = vrsqrt.f32 %v277_v41  ;;  %v263_v50 = vmul.f32 0.00390625, %v235_v22 }
 0x152   :  { %v567_v48 = vpack.c.bf16 %v391_v24, %v390_v44  ;;  %v348_v46 = vmul.f32 %v1032_v32, %v304_v26  ;;  %v349_v49 = vmul.f32 %v1034_v57, %v305_v39  ;;  %603 = vrsqrt.f32 %v278_v38 }
 0x153   :  { %v594_v52 = vpop.eup %593  ;;  %v350_v47 = vmul.f32 %v1032_v32, %v306_v28  ;;  %v351_v1 = vmul.f32 %v1034_v57, %v307_v23  ;;  %v279_v6 = vadd.f32 1e-05, %v263_v50  ;;  %v264_v4 = vmul.f32 0.00390625, %v238_v27 }
 0x154   :  { %v596_v54 = vpop.eup %595  ;;  %518 = vst [vmem:[#allocation5] sm:$0xff] %v567_v48  ;;  %v392_v34 = vadd.f32 %v1036_v30, %v348_v46  ;;  %v393_v35 = vadd.f32 %v1038_v55, %v349_v49  ;;  %v308_v59 = vmul.f32 %v594_v52, %v868_v56  ;;  %v309_v60 = vmul.f32 %v594_v52, %v872_v58  ;;  %v241_v61 = vpop.xlane.xlu1 %240 }
 0x155   :  { %v394_v33 = vadd.f32 %v1036_v30, %v350_v47  ;;  %v395_v36 = vadd.f32 %v1038_v55, %v351_v1  ;;  %v310_v31 = vmul.f32 %v596_v54, %v884_v12  ;;  %v311_v20 = vmul.f32 %v596_v54, %v888_v19  ;;  %v244_v28 = vpop.xlane.xlu0 %243 }
 0x156   :  { %v568_v13 = vpack.c.bf16 %v393_v35, %v392_v34  ;;  %v352_v14 = vmul.f32 %v1032_v32, %v308_v59  ;;  %v353_v15 = vmul.f32 %v1034_v57, %v309_v60  ;;  %605 = vrsqrt.f32 %v279_v6 }
 0x157   :  { %v598_v18 = vpop.eup %597  ;;  %v569_v41 = vpack.c.bf16 %v395_v36, %v394_v33  ;;  %v354_v56 = vmul.f32 %v1032_v32, %v310_v31  ;;  %v355_v58 = vmul.f32 %v1034_v57, %v311_v20  ;;  %v280_v38 = vadd.f32 1e-05, %v264_v4 }
 0x158   :  { %v600_v43 = vpop.eup %599  ;;  %519 = vst [vmem:[#allocation5 + $0x8] sm:$0xff] %v568_v13  ;;  %v396_v44 = vadd.f32 %v1036_v30, %v352_v14  ;;  %v397_v12 = vadd.f32 %v1038_v55, %v353_v15  ;;  %v312_v19 = vmul.f32 %v598_v18, %v892_v40  ;;  %v313_v24 = vmul.f32 %v598_v18, %v896_v42  ;;  %v247_v46 = vpop.xlane.xlu1 %246 }
 0x159   :  { %520 = vst [vmem:[#allocation5 + $0x10] sm:$0xff] %v569_v41  ;;  %v398_v26 = vadd.f32 %v1036_v30, %v354_v56  ;;  %v399_v39 = vadd.f32 %v1038_v55, %v355_v58  ;;  %v314_v22 = vmul.f32 %v600_v43, %v908_v21  ;;  %v315_v27 = vmul.f32 %v600_v43, %v912_v5  ;;  %v250_v13 = vpop.xlane.xlu0 %249 }
 0x15a   :  { %v570_v23 = vpack.c.bf16 %v397_v12, %v396_v44  ;;  %v356_v50 = vmul.f32 %v1032_v32, %v312_v19  ;;  %v357_v48 = vmul.f32 %v1034_v57, %v313_v24  ;;  %607 = vrsqrt.f32 %v280_v38 }
 0x15b   :  { %v602_v40 = vpop.eup %601  ;;  %v571_v49 = vpack.c.bf16 %v399_v39, %v398_v26  ;;  %v358_v42 = vmul.f32 %v1032_v32, %v314_v22  ;;  %v359_v52 = vmul.f32 %v1034_v57, %v315_v27  ;;  %v265_v47 = vmul.f32 0.00390625, %v241_v61 }
 0x15c   :  { %v604_v1 = vpop.eup %603  ;;  %521 = vst [vmem:[#allocation5 + $0x18] sm:$0xff] %v570_v23  ;;  %v400_v21 = vadd.f32 %v1036_v30, %v356_v50  ;;  %v401_v5 = vadd.f32 %v1038_v55, %v357_v48  ;;  %v316_v6 = vmul.f32 %v602_v40, %v916_v62  ;;  %v317_v4 = vmul.f32 %v602_v40, %v920_v63  ;;  %v253_v18 = vpop.xlane.xlu1 %252 }
 0x15d   :  { %522 = vst [vmem:[#allocation5 + $0x20] sm:$0xff] %v571_v49  ;;  %v402_v54 = vadd.f32 %v1036_v30, %v358_v42  ;;  %v403_v34 = vadd.f32 %v1038_v55, %v359_v52  ;;  %v318_v35 = vmul.f32 %v604_v1, %v932_v29  ;;  %v319_v59 = vmul.f32 %v604_v1, %v936_v10 }
 0x15e   :  { %v572_v60 = vpack.c.bf16 %v401_v5, %v400_v21  ;;  %v360_v61 = vmul.f32 %v1032_v32, %v316_v6  ;;  %v361_v33 = vmul.f32 %v1034_v57, %v317_v4  ;;  %v281_v36 = vadd.f32 1e-05, %v265_v47 }
 0x15f   :  { %v573_v31 = vpack.c.bf16 %v403_v34, %v402_v54  ;;  %v362_v62 = vmul.f32 %v1032_v32, %v318_v35  ;;  %v363_v63 = vmul.f32 %v1034_v57, %v319_v59  ;;  %v266_v20 = vmul.f32 0.00390625, %v244_v28 }
 0x160   :  { %v606_v14 = vpop.eup %605  ;;  %523 = vst [vmem:[#allocation5 + $0x28] sm:$0xff] %v572_v60  ;;  %v404_v15 = vadd.f32 %v1036_v30, %v360_v61  ;;  %v405_v29 = vadd.f32 %v1038_v55, %v361_v33  ;;  %609 = vrsqrt.f32 %v281_v36  ;;  %v267_v10 = vmul.f32 0.00390625, %v247_v46 }
 0x161   :  { %524 = vst [vmem:[#allocation5 + $0x30] sm:$0xff] %v573_v31  ;;  %v406_v41 = vadd.f32 %v1036_v30, %v362_v62  ;;  %v407_v56 = vadd.f32 %v1038_v55, %v363_v63  ;;  %v320_v58 = vmul.f32 %v606_v14, %v940_v11  ;;  %v321_v38 = vmul.f32 %v606_v14, %v944_v7 }
 0x162   :  { %v574_v43 = vpack.c.bf16 %v405_v29, %v404_v15  ;;  %v282_v44 = vadd.f32 1e-05, %v266_v20  ;;  %v283_v12 = vadd.f32 1e-05, %v267_v10  ;;  %v268_v19 = vmul.f32 0.00390625, %v250_v13 }
 0x163   :  { %v575_v24 = vpack.c.bf16 %v407_v56, %v406_v41  ;;  %v364_v26 = vmul.f32 %v1032_v32, %v320_v58  ;;  %v365_v39 = vmul.f32 %v1034_v57, %v321_v38  ;;  %v269_v22 = vmul.f32 0.00390625, %v253_v18 }
 0x164   :  { %v608_v27 = vpop.eup %607  ;;  %525 = vst [vmem:[#allocation5 + $0x38] sm:$0xff] %v574_v43  ;;  %611 = vrsqrt.f32 %v282_v44  ;;  %v284_v28 = vadd.f32 1e-05, %v268_v19 }
 0x165   :  { %526 = vst [vmem:[#allocation5 + $0x40] sm:$0xff] %v575_v24  ;;  %v408_v23 = vadd.f32 %v1036_v30, %v364_v26  ;;  %v409_v11 = vadd.f32 %v1038_v55, %v365_v39  ;;  %v322_v7 = vmul.f32 %v608_v27, %v956_v37  ;;  %v323_v50 = vmul.f32 %v608_v27, %v960_v16 }
 0x166   :  { %613 = vrsqrt.f32 %v283_v12  ;;  %v285_v48 = vadd.f32 1e-05, %v269_v22 }
 0x167   :  { %v576_v46 = vpack.c.bf16 %v409_v11, %v408_v23  ;;  %v366_v40 = vmul.f32 %v1032_v32, %v322_v7  ;;  %v367_v49 = vmul.f32 %v1034_v57, %v323_v50  ;;  %615 = vrsqrt.f32 %v284_v28 }
 0x168   :  { %617 = vrsqrt.f32 %v285_v48 }
 0x169   :  { %527 = vst [vmem:[#allocation5 + $0x48] sm:$0xff] %v576_v46  ;;  %v410_v42 = vadd.f32 %v1036_v30, %v366_v40  ;;  %v411_v52 = vadd.f32 %v1038_v55, %v367_v49 }
 0x16a   :  { %v610_v47 = vpop.eup %609 }
 0x16b   :  { %v577_v1 = vpack.c.bf16 %v411_v52, %v410_v42  ;;  %v324_v37 = vmul.f32 %v610_v47, %v964_v8  ;;  %v325_v16 = vmul.f32 %v610_v47, %v968_v17 }
 0x16d   :  { %528 = vst [vmem:[#allocation5 + $0x50] sm:$0xff] %v577_v1  ;;  %v368_v21 = vmul.f32 %v1032_v32, %v324_v37  ;;  %v369_v5 = vmul.f32 %v1034_v57, %v325_v16 }
 0x16e   :  { %v612_v6 = vpop.eup %611 }
 0x16f   :  { %v412_v4 = vadd.f32 %v1036_v30, %v368_v21  ;;  %v413_v54 = vadd.f32 %v1038_v55, %v369_v5  ;;  %v326_v34 = vmul.f32 %v612_v6, %v980_v45  ;;  %v327_v35 = vmul.f32 %v612_v6, %v984_v9 }
 0x170   :  { %v614_v59 = vpop.eup %613 }
 0x171   :  { %v616_v60 = vpop.eup %615  ;;  %v578_v61 = vpack.c.bf16 %v413_v54, %v412_v4  ;;  %v370_v8 = vmul.f32 %v1032_v32, %v326_v34  ;;  %v371_v17 = vmul.f32 %v1034_v57, %v327_v35  ;;  %v328_v33 = vmul.f32 %v614_v59, %v988_v2 }
 0x172   :  { %v618_v36 = vpop.eup %617  ;;  %v329_v31 = vmul.f32 %v614_v59, %v992_v25  ;;  %v330_v62 = vmul.f32 %v616_v60, %v1004_v53  ;;  %v331_v63 = vmul.f32 %v616_v60, %v1008_v51 }
 0x173   :  { %529 = vst [vmem:[#allocation5 + $0x58] sm:$0xff] %v578_v61  ;;  %v414_v45 = vadd.f32 %v1036_v30, %v370_v8  ;;  %v415_v9 = vadd.f32 %v1038_v55, %v371_v17  ;;  %v372_v20 = vmul.f32 %v1032_v32, %v328_v33  ;;  %v332_v13 = vmul.f32 %v618_v36, %v1012_v3 }
 0x174   :  { %v373_v14 = vmul.f32 %v1034_v57, %v329_v31  ;;  %v374_v2 = vmul.f32 %v1032_v32, %v330_v62  ;;  %v375_v15 = vmul.f32 %v1034_v57, %v331_v63  ;;  %v333_v25 = vmul.f32 %v618_v36, %v1016_v0 }
 0x175   :  { %v579_v53 = vpack.c.bf16 %v415_v9, %v414_v45  ;;  %v416_v51 = vadd.f32 %v1036_v30, %v372_v20  ;;  %v376_v29 = vmul.f32 %v1032_v32, %v332_v13 }
 0x176   :  { %v417_v10 = vadd.f32 %v1038_v55, %v373_v14  ;;  %v418_v18 = vadd.f32 %v1036_v30, %v374_v2  ;;  %v419_v41 = vadd.f32 %v1038_v55, %v375_v15  ;;  %v377_v3 = vmul.f32 %v1034_v57, %v333_v25 }
 0x177   :  { %530 = vst [vmem:[#allocation5 + $0x60] sm:$0xff] %v579_v53  ;;  %v420_v56 = vadd.f32 %v1036_v30, %v376_v29 }
 0x178   :  { %v580_v58 = vpack.c.bf16 %v417_v10, %v416_v51  ;;  %v581_v0 = vpack.c.bf16 %v419_v41, %v418_v18  ;;  %v421_v38 = vadd.f32 %v1038_v55, %v377_v3 }
 0x17a   :  { %531 = vst [vmem:[#allocation5 + $0x68] sm:$0xff] %v580_v58  ;;  %532 = vst [vmem:[#allocation5 + $0x70] sm:$0xff] %v581_v0  ;;  %v582_v32 = vpack.c.bf16 %v421_v38, %v420_v56 }
 0x17c   :  { %533 = vst [vmem:[#allocation5 + $0x78] sm:$0xff] %v582_v32 }
 0x17d   :  { %652 = shalt.err (!%p649_p12)
}
 0x17e   :  { %s653_s5 = scalar_lea.hbm %s1154_s3, 2048 }
 0x17f   :  { %p654_p13 = scmp.ne.s32.totalorder %s1154_s3, %s653_s5  ;;  %p657_p0 = scmp.lt.u32.totalorder %s653_s5, %s1154_s3 }
 0x181   :  { %p659_p1 = pnand %p657_p0, %p654_p13 }
 0x183   :  { %662 = shalt.err (!%p659_p1)
}
 0x184   :  { %545 = dma.vmem_to_hbm [thread:$0]  %s540_s2, 2048, %s1154_s3, [#allocation4], %s668_s22, %s668_s22, %s669_s23  }
 0x185   :  { %665 = dma.done.wait [#allocation4], 2048  }
 0x186   :  { %666 = vsyncadd [#allocation4], 4294965248 }
 0x187   :  { %549 = vsyncpa [#allocation3], 1 }
 0x188   :  { %550 = vsyncpa [#allocation4], 1 }

</bundles_post_ra>
